<compile_context>
chip_gen: v7x
topology: tpu7x:2x2x1
jax: 0.10.0
libtpu: 0.0.40
codegen_flags: <defaults>
</compile_context>

<pallas_src>
import jax
import jax.numpy as jnp
from jax.experimental import pallas as pl
from jax.experimental.pallas import tpu as pltpu

BETA = 1.0
THRESHOLD = 1.0

NUM_STEPS = 5
BATCH = 8
NUM_INPUT = 128
NUM_HIDDEN = 128
NUM_OUTPUT = 16

LANE = 128  # TPU lane width; layer-2 outputs are padded to this for dense stores


def _snn_kernel(x_ref, w1_ref, w2_ref,
                spk1_ref, mem1_ref, spk2_ref, mem2_ref):
    T, B, F_in = x_ref.shape
    H = w1_ref.shape[1]
    N_pad = w2_ref.shape[1]  # lane-dense padded output width (multiple of 128)

    # ---- layer 1 matmul hoisted out of the recurrence (one big MXU push) ----
    # [T, B, F_in] -> [T*B, F_in]: merges leading dims only, no tile crossing.
    x_all = x_ref[...].reshape(T * B, F_in)
    cur1_all = jnp.dot(x_all, w1_ref[...],
                       preferred_element_type=jnp.float32)          # [T*B, H]

    w2 = w2_ref[...]                                                 # [H, N_pad]

    # init_leaky(): membrane potentials start at zero.
    mem1 = jnp.zeros((B, H), jnp.float32)
    mem2 = jnp.zeros((B, N_pad), jnp.float32)

    # T is tiny (5): static unroll of the true recurrence (layer-2 path).
    for t in range(T):
        cur1 = cur1_all[t * B:(t + 1) * B, :]                        # [B, H]
        reset1 = (mem1 > THRESHOLD).astype(jnp.float32)
        mem1 = BETA * mem1 + cur1 - reset1 * THRESHOLD
        spk1 = (mem1 > THRESHOLD).astype(jnp.float32)

        cur2 = jnp.dot(spk1, w2, preferred_element_type=jnp.float32)  # [B, N_pad]
        reset2 = (mem2 > THRESHOLD).astype(jnp.float32)
        mem2 = BETA * mem2 + cur2 - reset2 * THRESHOLD
        spk2 = (mem2 > THRESHOLD).astype(jnp.float32)

        # Full-width, lane-dense stores (static index along the time axis).
        spk1_ref[t] = spk1
        mem1_ref[t] = mem1
        spk2_ref[t] = spk2
        mem2_ref[t] = mem2


def snn_forward(x, w1, w2):
    """x: [T, B, F_in]; w1: [F_in, H]; w2: [H, F_out]. Returns 4 arrays [T,B,*]."""
    T, B, F_in = x.shape
    H = w1.shape[1]
    F_out = w2.shape[1]

    # Zero-pad W2 columns to a lane-dense width; padded mem2/spk2 columns stay 0.
    n_pad = max(LANE, ((F_out + LANE - 1) // LANE) * LANE)
    w2_pad = jnp.zeros((H, n_pad), jnp.float32).at[:, :F_out].set(w2)

    out_shapes = (
        jax.ShapeDtypeStruct((T, B, H), jnp.float32),       # spk1_rec
        jax.ShapeDtypeStruct((T, B, H), jnp.float32),       # mem1_rec
        jax.ShapeDtypeStruct((T, B, n_pad), jnp.float32),   # spk2_rec (padded)
        jax.ShapeDtypeStruct((T, B, n_pad), jnp.float32),   # mem2_rec (padded)
    )

    grid_spec = pltpu.PrefetchScalarGridSpec(
        num_scalar_prefetch=0,
        grid=(1,),  # single invocation: whole problem fits trivially in VMEM
        in_specs=[
            pl.BlockSpec((T, B, F_in), lambda i: (0, 0, 0)),
            pl.BlockSpec((F_in, H), lambda i: (0, 0)),
            pl.BlockSpec((H, n_pad), lambda i: (0, 0)),
        ],
        out_specs=[
            pl.BlockSpec((T, B, H), lambda i: (0, 0, 0)),
            pl.BlockSpec((T, B, H), lambda i: (0, 0, 0)),
            pl.BlockSpec((T, B, n_pad), lambda i: (0, 0, 0)),
            pl.BlockSpec((T, B, n_pad), lambda i: (0, 0, 0)),
        ],
    )

    spk1, mem1, spk2_pad, mem2_pad = pl.pallas_call(
        _snn_kernel,
        out_shape=out_shapes,
        grid_spec=grid_spec,
        compiler_params=pltpu.CompilerParams(
            dimension_semantics=("arbitrary",),
        ),
    )(x, w1, w2_pad)

    # Drop lane padding outside the kernel (cheap XLA slice).
    return spk1, mem1, spk2_pad[..., :F_out], mem2_pad[..., :F_out]


def snn_forward_ref(x, w1, w2):
    """Pure-JAX reference of the same recurrence (for validation)."""
    T, B, _ = x.shape
    mem1 = jnp.zeros((B, w1.shape[1]), jnp.float32)
    mem2 = jnp.zeros((B, w2.shape[1]), jnp.float32)
    s1, m1, s2, m2 = [], [], [], []
    for t in range(T):
        cur1 = x[t] @ w1
        reset1 = (mem1 > THRESHOLD).astype(jnp.float32)
        mem1 = BETA * mem1 + cur1 - reset1 * THRESHOLD
        spk1 = (mem1 > THRESHOLD).astype(jnp.float32)
        cur2 = spk1 @ w2
        reset2 = (mem2 > THRESHOLD).astype(jnp.float32)
        mem2 = BETA * mem2 + cur2 - reset2 * THRESHOLD
        spk2 = (mem2 > THRESHOLD).astype(jnp.float32)
        s1.append(spk1); m1.append(mem1); s2.append(spk2); m2.append(mem2)
    return (jnp.stack(s1), jnp.stack(m1), jnp.stack(s2), jnp.stack(m2))


if __name__ == "__main__":
    key = jax.random.PRNGKey(0)
    kx, k1, k2 = jax.random.split(key, 3)

    # Deterministic synthetic parameters (PyTorch-style uniform(-1/sqrt(fan_in), +)).
    b1 = 1.0 / (NUM_INPUT ** 0.5)
    b2 = 1.0 / (NUM_HIDDEN ** 0.5)
    w1 = jax.random.uniform(k1, (NUM_INPUT, NUM_HIDDEN), jnp.float32, -b1, b1)
    w2 = jax.random.uniform(k2, (NUM_HIDDEN, NUM_OUTPUT), jnp.float32, -b2, b2)

    # Input spike train / currents: [T, B, F_in]
    x = jax.random.uniform(kx, (NUM_STEPS, BATCH, NUM_INPUT), jnp.float32)

    outs = snn_forward(x, w1, w2)
    outs = jax.block_until_ready(outs)

    refs = snn_forward_ref(x, w1, w2)
    for o, r in zip(outs, refs):
        assert o.shape == r.shape
        assert jnp.allclose(o, r, atol=1e-5, rtol=1e-5)

    print("KERNEL_OK")
</pallas_src>

<mosaic_0001>
module attributes {stable_mosaic.version = 11 : i64} {
  func.func @_snn_kernel(%arg0: i32, %arg1: memref<5x8x128xf32, #tpu.memory_space<vmem>>, %arg2: memref<128x128xf32, #tpu.memory_space<vmem>>, %arg3: memref<128x128xf32, #tpu.memory_space<vmem>>, %arg4: memref<5x8x128xf32, #tpu.memory_space<vmem>>, %arg5: memref<5x8x128xf32, #tpu.memory_space<vmem>>, %arg6: memref<5x8x128xf32, #tpu.memory_space<vmem>>, %arg7: memref<5x8x128xf32, #tpu.memory_space<vmem>>) attributes {dimension_semantics = [#tpu.dimension_semantics<arbitrary>], iteration_bounds = array<i64: 1>, scalar_prefetch = 0 : i64, scratch_operands = 0 : i64, tpu.core_type = #tpu.core_type<tc>, window_params = [{pipeline_mode = #tpu.pipeline_mode<synchronous>, transform_indices = @transform_0, window_bounds = array<i64: 5, 8, 128>}, {pipeline_mode = #tpu.pipeline_mode<synchronous>, transform_indices = @transform_1, window_bounds = array<i64: 128, 128>}, {pipeline_mode = #tpu.pipeline_mode<synchronous>, transform_indices = @transform_2, window_bounds = array<i64: 128, 128>}, {pipeline_mode = #tpu.pipeline_mode<synchronous>, transform_indices = @transform_3, window_bounds = array<i64: 5, 8, 128>}, {pipeline_mode = #tpu.pipeline_mode<synchronous>, transform_indices = @transform_4, window_bounds = array<i64: 5, 8, 128>}, {pipeline_mode = #tpu.pipeline_mode<synchronous>, transform_indices = @transform_5, window_bounds = array<i64: 5, 8, 128>}, {pipeline_mode = #tpu.pipeline_mode<synchronous>, transform_indices = @transform_6, window_bounds = array<i64: 5, 8, 128>}]} {
    %c0 = arith.constant 0 : index
    %c0_0 = arith.constant 0 : index
    %c0_1 = arith.constant 0 : index
    %0 = vector.load %arg1[%c0, %c0_0, %c0_1] : memref<5x8x128xf32, #tpu.memory_space<vmem>>, vector<5x8x128xf32>
    %1 = vector.shape_cast %0 : vector<5x8x128xf32> to vector<40x128xf32>
    %c0_2 = arith.constant 0 : index
    %c0_3 = arith.constant 0 : index
    %2 = vector.load %arg2[%c0_2, %c0_3] : memref<128x128xf32, #tpu.memory_space<vmem>>, vector<128x128xf32>
    %cst = arith.constant dense<0.000000e+00> : vector<40x128xf32>
    %3 = tpu.matmul %1, %2, %cst {dimension_numbers = #tpu.dot_dimension_numbers<[1], [0], [0], [1], [0, 0, 1, 1], [], []>} : vector<40x128xf32>, vector<128x128xf32>, vector<40x128xf32> -> vector<40x128xf32>
    %c0_4 = arith.constant 0 : index
    %c0_5 = arith.constant 0 : index
    %4 = vector.load %arg3[%c0_4, %c0_5] : memref<128x128xf32, #tpu.memory_space<vmem>>, vector<128x128xf32>
    %cst_6 = arith.constant 0.000000e+00 : f32
    %5 = vector.broadcast %cst_6 : f32 to vector<8x128xf32>
    %cst_7 = arith.constant 0.000000e+00 : f32
    %6 = vector.broadcast %cst_7 : f32 to vector<8x128xf32>
    %7 = vector.extract_strided_slice %3 {offsets = [0, 0], sizes = [8, 128], strides = [1, 1]} : vector<40x128xf32> to vector<8x128xf32>
    %cst_8 = arith.constant 1.000000e+00 : f32
    %8 = vector.broadcast %cst_8 : f32 to vector<8x128xf32>
    %9 = arith.cmpf ogt, %5, %8 : vector<8x128xf32>
    %10 = arith.extui %9 : vector<8x128xi1> to vector<8x128xi32>
    %11 = arith.sitofp %10 : vector<8x128xi32> to vector<8x128xf32>
    %cst_9 = arith.constant 1.000000e+00 : f32
    %12 = vector.broadcast %cst_9 : f32 to vector<8x128xf32>
    %13 = arith.mulf %12, %5 : vector<8x128xf32>
    %14 = arith.addf %13, %7 : vector<8x128xf32>
    %cst_10 = arith.constant 1.000000e+00 : f32
    %15 = vector.broadcast %cst_10 : f32 to vector<8x128xf32>
    %16 = arith.mulf %11, %15 : vector<8x128xf32>
    %17 = arith.subf %14, %16 : vector<8x128xf32>
    %cst_11 = arith.constant 1.000000e+00 : f32
    %18 = vector.broadcast %cst_11 : f32 to vector<8x128xf32>
    %19 = arith.cmpf ogt, %17, %18 : vector<8x128xf32>
    %20 = arith.extui %19 : vector<8x128xi1> to vector<8x128xi32>
    %21 = arith.sitofp %20 : vector<8x128xi32> to vector<8x128xf32>
    %cst_12 = arith.constant dense<0.000000e+00> : vector<8x128xf32>
    %22 = tpu.matmul %21, %4, %cst_12 {dimension_numbers = #tpu.dot_dimension_numbers<[1], [0], [0], [1], [0, 0, 1, 1], [], []>} : vector<8x128xf32>, vector<128x128xf32>, vector<8x128xf32> -> vector<8x128xf32>
    %cst_13 = arith.constant 1.000000e+00 : f32
    %23 = vector.broadcast %cst_13 : f32 to vector<8x128xf32>
    %24 = arith.cmpf ogt, %6, %23 : vector<8x128xf32>
    %25 = arith.extui %24 : vector<8x128xi1> to vector<8x128xi32>
    %26 = arith.sitofp %25 : vector<8x128xi32> to vector<8x128xf32>
    %cst_14 = arith.constant 1.000000e+00 : f32
    %27 = vector.broadcast %cst_14 : f32 to vector<8x128xf32>
    %28 = arith.mulf %27, %6 : vector<8x128xf32>
    %29 = arith.addf %28, %22 : vector<8x128xf32>
    %cst_15 = arith.constant 1.000000e+00 : f32
    %30 = vector.broadcast %cst_15 : f32 to vector<8x128xf32>
    %31 = arith.mulf %26, %30 : vector<8x128xf32>
    %32 = arith.subf %29, %31 : vector<8x128xf32>
    %cst_16 = arith.constant 1.000000e+00 : f32
    %33 = vector.broadcast %cst_16 : f32 to vector<8x128xf32>
    %34 = arith.cmpf ogt, %32, %33 : vector<8x128xf32>
    %35 = arith.extui %34 : vector<8x128xi1> to vector<8x128xi32>
    %36 = arith.sitofp %35 : vector<8x128xi32> to vector<8x128xf32>
    %c0_17 = arith.constant 0 : index
    %c0_18 = arith.constant 0 : index
    %c0_19 = arith.constant 0 : index
    %37 = vector.load %arg4[%c0_17, %c0_18, %c0_19] : memref<5x8x128xf32, #tpu.memory_space<vmem>>, vector<1x8x128xf32>
    %38 = vector.shape_cast %37 : vector<1x8x128xf32> to vector<8x128xf32>
    %39 = vector.shape_cast %21 : vector<8x128xf32> to vector<1x8x128xf32>
    tpu.vector_store %arg4[%c0_17, %c0_18, %c0_19], %39 {strides = array<i32>} : memref<5x8x128xf32, #tpu.memory_space<vmem>>, vector<1x8x128xf32>,
    %c0_20 = arith.constant 0 : index
    %c0_21 = arith.constant 0 : index
    %c0_22 = arith.constant 0 : index
    %40 = vector.load %arg5[%c0_20, %c0_21, %c0_22] : memref<5x8x128xf32, #tpu.memory_space<vmem>>, vector<1x8x128xf32>
    %41 = vector.shape_cast %40 : vector<1x8x128xf32> to vector<8x128xf32>
    %42 = vector.shape_cast %17 : vector<8x128xf32> to vector<1x8x128xf32>
    tpu.vector_store %arg5[%c0_20, %c0_21, %c0_22], %42 {strides = array<i32>} : memref<5x8x128xf32, #tpu.memory_space<vmem>>, vector<1x8x128xf32>,
    %c0_23 = arith.constant 0 : index
    %c0_24 = arith.constant 0 : index
    %c0_25 = arith.constant 0 : index
    %43 = vector.load %arg6[%c0_23, %c0_24, %c0_25] : memref<5x8x128xf32, #tpu.memory_space<vmem>>, vector<1x8x128xf32>
    %44 = vector.shape_cast %43 : vector<1x8x128xf32> to vector<8x128xf32>
    %45 = vector.shape_cast %36 : vector<8x128xf32> to vector<1x8x128xf32>
    tpu.vector_store %arg6[%c0_23, %c0_24, %c0_25], %45 {strides = array<i32>} : memref<5x8x128xf32, #tpu.memory_space<vmem>>, vector<1x8x128xf32>,
    %c0_26 = arith.constant 0 : index
    %c0_27 = arith.constant 0 : index
    %c0_28 = arith.constant 0 : index
    %46 = vector.load %arg7[%c0_26, %c0_27, %c0_28] : memref<5x8x128xf32, #tpu.memory_space<vmem>>, vector<1x8x128xf32>
    %47 = vector.shape_cast %46 : vector<1x8x128xf32> to vector<8x128xf32>
    %48 = vector.shape_cast %32 : vector<8x128xf32> to vector<1x8x128xf32>
    tpu.vector_store %arg7[%c0_26, %c0_27, %c0_28], %48 {strides = array<i32>} : memref<5x8x128xf32, #tpu.memory_space<vmem>>, vector<1x8x128xf32>,
    %49 = vector.extract_strided_slice %3 {offsets = [8, 0], sizes = [8, 128], strides = [1, 1]} : vector<40x128xf32> to vector<8x128xf32>
    %cst_29 = arith.constant 1.000000e+00 : f32
    %50 = vector.broadcast %cst_29 : f32 to vector<8x128xf32>
    %51 = arith.cmpf ogt, %17, %50 : vector<8x128xf32>
    %52 = arith.extui %51 : vector<8x128xi1> to vector<8x128xi32>
    %53 = arith.sitofp %52 : vector<8x128xi32> to vector<8x128xf32>
    %cst_30 = arith.constant 1.000000e+00 : f32
    %54 = vector.broadcast %cst_30 : f32 to vector<8x128xf32>
    %55 = arith.mulf %54, %17 : vector<8x128xf32>
    %56 = arith.addf %55, %49 : vector<8x128xf32>
    %cst_31 = arith.constant 1.000000e+00 : f32
    %57 = vector.broadcast %cst_31 : f32 to vector<8x128xf32>
    %58 = arith.mulf %53, %57 : vector<8x128xf32>
    %59 = arith.subf %56, %58 : vector<8x128xf32>
    %cst_32 = arith.constant 1.000000e+00 : f32
    %60 = vector.broadcast %cst_32 : f32 to vector<8x128xf32>
    %61 = arith.cmpf ogt, %59, %60 : vector<8x128xf32>
    %62 = arith.extui %61 : vector<8x128xi1> to vector<8x128xi32>
    %63 = arith.sitofp %62 : vector<8x128xi32> to vector<8x128xf32>
    %cst_33 = arith.constant dense<0.000000e+00> : vector<8x128xf32>
    %64 = tpu.matmul %63, %4, %cst_33 {dimension_numbers = #tpu.dot_dimension_numbers<[1], [0], [0], [1], [0, 0, 1, 1], [], []>} : vector<8x128xf32>, vector<128x128xf32>, vector<8x128xf32> -> vector<8x128xf32>
    %cst_34 = arith.constant 1.000000e+00 : f32
    %65 = vector.broadcast %cst_34 : f32 to vector<8x128xf32>
    %66 = arith.cmpf ogt, %32, %65 : vector<8x128xf32>
    %67 = arith.extui %66 : vector<8x128xi1> to vector<8x128xi32>
    %68 = arith.sitofp %67 : vector<8x128xi32> to vector<8x128xf32>
    %cst_35 = arith.constant 1.000000e+00 : f32
    %69 = vector.broadcast %cst_35 : f32 to vector<8x128xf32>
    %70 = arith.mulf %69, %32 : vector<8x128xf32>
    %71 = arith.addf %70, %64 : vector<8x128xf32>
    %cst_36 = arith.constant 1.000000e+00 : f32
    %72 = vector.broadcast %cst_36 : f32 to vector<8x128xf32>
    %73 = arith.mulf %68, %72 : vector<8x128xf32>
    %74 = arith.subf %71, %73 : vector<8x128xf32>
    %cst_37 = arith.constant 1.000000e+00 : f32
    %75 = vector.broadcast %cst_37 : f32 to vector<8x128xf32>
    %76 = arith.cmpf ogt, %74, %75 : vector<8x128xf32>
    %77 = arith.extui %76 : vector<8x128xi1> to vector<8x128xi32>
    %78 = arith.sitofp %77 : vector<8x128xi32> to vector<8x128xf32>
    %c1 = arith.constant 1 : index
    %c0_38 = arith.constant 0 : index
    %c0_39 = arith.constant 0 : index
    %79 = vector.load %arg4[%c1, %c0_38, %c0_39] : memref<5x8x128xf32, #tpu.memory_space<vmem>>, vector<1x8x128xf32>
    %80 = vector.shape_cast %79 : vector<1x8x128xf32> to vector<8x128xf32>
    %81 = vector.shape_cast %63 : vector<8x128xf32> to vector<1x8x128xf32>
    tpu.vector_store %arg4[%c1, %c0_38, %c0_39], %81 {strides = array<i32>} : memref<5x8x128xf32, #tpu.memory_space<vmem>>, vector<1x8x128xf32>,
    %c1_40 = arith.constant 1 : index
    %c0_41 = arith.constant 0 : index
    %c0_42 = arith.constant 0 : index
    %82 = vector.load %arg5[%c1_40, %c0_41, %c0_42] : memref<5x8x128xf32, #tpu.memory_space<vmem>>, vector<1x8x128xf32>
    %83 = vector.shape_cast %82 : vector<1x8x128xf32> to vector<8x128xf32>
    %84 = vector.shape_cast %59 : vector<8x128xf32> to vector<1x8x128xf32>
    tpu.vector_store %arg5[%c1_40, %c0_41, %c0_42], %84 {strides = array<i32>} : memref<5x8x128xf32, #tpu.memory_space<vmem>>, vector<1x8x128xf32>,
    %c1_43 = arith.constant 1 : index
    %c0_44 = arith.constant 0 : index
    %c0_45 = arith.constant 0 : index
    %85 = vector.load %arg6[%c1_43, %c0_44, %c0_45] : memref<5x8x128xf32, #tpu.memory_space<vmem>>, vector<1x8x128xf32>
    %86 = vector.shape_cast %85 : vector<1x8x128xf32> to vector<8x128xf32>
    %87 = vector.shape_cast %78 : vector<8x128xf32> to vector<1x8x128xf32>
    tpu.vector_store %arg6[%c1_43, %c0_44, %c0_45], %87 {strides = array<i32>} : memref<5x8x128xf32, #tpu.memory_space<vmem>>, vector<1x8x128xf32>,
    %c1_46 = arith.constant 1 : index
    %c0_47 = arith.constant 0 : index
    %c0_48 = arith.constant 0 : index
    %88 = vector.load %arg7[%c1_46, %c0_47, %c0_48] : memref<5x8x128xf32, #tpu.memory_space<vmem>>, vector<1x8x128xf32>
    %89 = vector.shape_cast %88 : vector<1x8x128xf32> to vector<8x128xf32>
    %90 = vector.shape_cast %74 : vector<8x128xf32> to vector<1x8x128xf32>
    tpu.vector_store %arg7[%c1_46, %c0_47, %c0_48], %90 {strides = array<i32>} : memref<5x8x128xf32, #tpu.memory_space<vmem>>, vector<1x8x128xf32>,
    %91 = vector.extract_strided_slice %3 {offsets = [16, 0], sizes = [8, 128], strides = [1, 1]} : vector<40x128xf32> to vector<8x128xf32>
    %cst_49 = arith.constant 1.000000e+00 : f32
    %92 = vector.broadcast %cst_49 : f32 to vector<8x128xf32>
    %93 = arith.cmpf ogt, %59, %92 : vector<8x128xf32>
    %94 = arith.extui %93 : vector<8x128xi1> to vector<8x128xi32>
    %95 = arith.sitofp %94 : vector<8x128xi32> to vector<8x128xf32>
    %cst_50 = arith.constant 1.000000e+00 : f32
    %96 = vector.broadcast %cst_50 : f32 to vector<8x128xf32>
    %97 = arith.mulf %96, %59 : vector<8x128xf32>
    %98 = arith.addf %97, %91 : vector<8x128xf32>
    %cst_51 = arith.constant 1.000000e+00 : f32
    %99 = vector.broadcast %cst_51 : f32 to vector<8x128xf32>
    %100 = arith.mulf %95, %99 : vector<8x128xf32>
    %101 = arith.subf %98, %100 : vector<8x128xf32>
    %cst_52 = arith.constant 1.000000e+00 : f32
    %102 = vector.broadcast %cst_52 : f32 to vector<8x128xf32>
    %103 = arith.cmpf ogt, %101, %102 : vector<8x128xf32>
    %104 = arith.extui %103 : vector<8x128xi1> to vector<8x128xi32>
    %105 = arith.sitofp %104 : vector<8x128xi32> to vector<8x128xf32>
    %cst_53 = arith.constant dense<0.000000e+00> : vector<8x128xf32>
    %106 = tpu.matmul %105, %4, %cst_53 {dimension_numbers = #tpu.dot_dimension_numbers<[1], [0], [0], [1], [0, 0, 1, 1], [], []>} : vector<8x128xf32>, vector<128x128xf32>, vector<8x128xf32> -> vector<8x128xf32>
    %cst_54 = arith.constant 1.000000e+00 : f32
    %107 = vector.broadcast %cst_54 : f32 to vector<8x128xf32>
    %108 = arith.cmpf ogt, %74, %107 : vector<8x128xf32>
    %109 = arith.extui %108 : vector<8x128xi1> to vector<8x128xi32>
    %110 = arith.sitofp %109 : vector<8x128xi32> to vector<8x128xf32>
    %cst_55 = arith.constant 1.000000e+00 : f32
    %111 = vector.broadcast %cst_55 : f32 to vector<8x128xf32>
    %112 = arith.mulf %111, %74 : vector<8x128xf32>
    %113 = arith.addf %112, %106 : vector<8x128xf32>
    %cst_56 = arith.constant 1.000000e+00 : f32
    %114 = vector.broadcast %cst_56 : f32 to vector<8x128xf32>
    %115 = arith.mulf %110, %114 : vector<8x128xf32>
    %116 = arith.subf %113, %115 : vector<8x128xf32>
    %cst_57 = arith.constant 1.000000e+00 : f32
    %117 = vector.broadcast %cst_57 : f32 to vector<8x128xf32>
    %118 = arith.cmpf ogt, %116, %117 : vector<8x128xf32>
    %119 = arith.extui %118 : vector<8x128xi1> to vector<8x128xi32>
    %120 = arith.sitofp %119 : vector<8x128xi32> to vector<8x128xf32>
    %c2 = arith.constant 2 : index
    %c0_58 = arith.constant 0 : index
    %c0_59 = arith.constant 0 : index
    %121 = vector.load %arg4[%c2, %c0_58, %c0_59] : memref<5x8x128xf32, #tpu.memory_space<vmem>>, vector<1x8x128xf32>
    %122 = vector.shape_cast %121 : vector<1x8x128xf32> to vector<8x128xf32>
    %123 = vector.shape_cast %105 : vector<8x128xf32> to vector<1x8x128xf32>
    tpu.vector_store %arg4[%c2, %c0_58, %c0_59], %123 {strides = array<i32>} : memref<5x8x128xf32, #tpu.memory_space<vmem>>, vector<1x8x128xf32>,
    %c2_60 = arith.constant 2 : index
    %c0_61 = arith.constant 0 : index
    %c0_62 = arith.constant 0 : index
    %124 = vector.load %arg5[%c2_60, %c0_61, %c0_62] : memref<5x8x128xf32, #tpu.memory_space<vmem>>, vector<1x8x128xf32>
    %125 = vector.shape_cast %124 : vector<1x8x128xf32> to vector<8x128xf32>
    %126 = vector.shape_cast %101 : vector<8x128xf32> to vector<1x8x128xf32>
    tpu.vector_store %arg5[%c2_60, %c0_61, %c0_62], %126 {strides = array<i32>} : memref<5x8x128xf32, #tpu.memory_space<vmem>>, vector<1x8x128xf32>,
    %c2_63 = arith.constant 2 : index
    %c0_64 = arith.constant 0 : index
    %c0_65 = arith.constant 0 : index
    %127 = vector.load %arg6[%c2_63, %c0_64, %c0_65] : memref<5x8x128xf32, #tpu.memory_space<vmem>>, vector<1x8x128xf32>
    %128 = vector.shape_cast %127 : vector<1x8x128xf32> to vector<8x128xf32>
    %129 = vector.shape_cast %120 : vector<8x128xf32> to vector<1x8x128xf32>
    tpu.vector_store %arg6[%c2_63, %c0_64, %c0_65], %129 {strides = array<i32>} : memref<5x8x128xf32, #tpu.memory_space<vmem>>, vector<1x8x128xf32>,
    %c2_66 = arith.constant 2 : index
    %c0_67 = arith.constant 0 : index
    %c0_68 = arith.constant 0 : index
    %130 = vector.load %arg7[%c2_66, %c0_67, %c0_68] : memref<5x8x128xf32, #tpu.memory_space<vmem>>, vector<1x8x128xf32>
    %131 = vector.shape_cast %130 : vector<1x8x128xf32> to vector<8x128xf32>
    %132 = vector.shape_cast %116 : vector<8x128xf32> to vector<1x8x128xf32>
    tpu.vector_store %arg7[%c2_66, %c0_67, %c0_68], %132 {strides = array<i32>} : memref<5x8x128xf32, #tpu.memory_space<vmem>>, vector<1x8x128xf32>,
    %133 = vector.extract_strided_slice %3 {offsets = [24, 0], sizes = [8, 128], strides = [1, 1]} : vector<40x128xf32> to vector<8x128xf32>
    %cst_69 = arith.constant 1.000000e+00 : f32
    %134 = vector.broadcast %cst_69 : f32 to vector<8x128xf32>
    %135 = arith.cmpf ogt, %101, %134 : vector<8x128xf32>
    %136 = arith.extui %135 : vector<8x128xi1> to vector<8x128xi32>
    %137 = arith.sitofp %136 : vector<8x128xi32> to vector<8x128xf32>
    %cst_70 = arith.constant 1.000000e+00 : f32
    %138 = vector.broadcast %cst_70 : f32 to vector<8x128xf32>
    %139 = arith.mulf %138, %101 : vector<8x128xf32>
    %140 = arith.addf %139, %133 : vector<8x128xf32>
    %cst_71 = arith.constant 1.000000e+00 : f32
    %141 = vector.broadcast %cst_71 : f32 to vector<8x128xf32>
    %142 = arith.mulf %137, %141 : vector<8x128xf32>
    %143 = arith.subf %140, %142 : vector<8x128xf32>
    %cst_72 = arith.constant 1.000000e+00 : f32
    %144 = vector.broadcast %cst_72 : f32 to vector<8x128xf32>
    %145 = arith.cmpf ogt, %143, %144 : vector<8x128xf32>
    %146 = arith.extui %145 : vector<8x128xi1> to vector<8x128xi32>
    %147 = arith.sitofp %146 : vector<8x128xi32> to vector<8x128xf32>
    %cst_73 = arith.constant dense<0.000000e+00> : vector<8x128xf32>
    %148 = tpu.matmul %147, %4, %cst_73 {dimension_numbers = #tpu.dot_dimension_numbers<[1], [0], [0], [1], [0, 0, 1, 1], [], []>} : vector<8x128xf32>, vector<128x128xf32>, vector<8x128xf32> -> vector<8x128xf32>
    %cst_74 = arith.constant 1.000000e+00 : f32
    %149 = vector.broadcast %cst_74 : f32 to vector<8x128xf32>
    %150 = arith.cmpf ogt, %116, %149 : vector<8x128xf32>
    %151 = arith.extui %150 : vector<8x128xi1> to vector<8x128xi32>
    %152 = arith.sitofp %151 : vector<8x128xi32> to vector<8x128xf32>
    %cst_75 = arith.constant 1.000000e+00 : f32
    %153 = vector.broadcast %cst_75 : f32 to vector<8x128xf32>
    %154 = arith.mulf %153, %116 : vector<8x128xf32>
    %155 = arith.addf %154, %148 : vector<8x128xf32>
    %cst_76 = arith.constant 1.000000e+00 : f32
    %156 = vector.broadcast %cst_76 : f32 to vector<8x128xf32>
    %157 = arith.mulf %152, %156 : vector<8x128xf32>
    %158 = arith.subf %155, %157 : vector<8x128xf32>
    %cst_77 = arith.constant 1.000000e+00 : f32
    %159 = vector.broadcast %cst_77 : f32 to vector<8x128xf32>
    %160 = arith.cmpf ogt, %158, %159 : vector<8x128xf32>
    %161 = arith.extui %160 : vector<8x128xi1> to vector<8x128xi32>
    %162 = arith.sitofp %161 : vector<8x128xi32> to vector<8x128xf32>
    %c3 = arith.constant 3 : index
    %c0_78 = arith.constant 0 : index
    %c0_79 = arith.constant 0 : index
    %163 = vector.load %arg4[%c3, %c0_78, %c0_79] : memref<5x8x128xf32, #tpu.memory_space<vmem>>, vector<1x8x128xf32>
    %164 = vector.shape_cast %163 : vector<1x8x128xf32> to vector<8x128xf32>
    %165 = vector.shape_cast %147 : vector<8x128xf32> to vector<1x8x128xf32>
    tpu.vector_store %arg4[%c3, %c0_78, %c0_79], %165 {strides = array<i32>} : memref<5x8x128xf32, #tpu.memory_space<vmem>>, vector<1x8x128xf32>,
    %c3_80 = arith.constant 3 : index
    %c0_81 = arith.constant 0 : index
    %c0_82 = arith.constant 0 : index
    %166 = vector.load %arg5[%c3_80, %c0_81, %c0_82] : memref<5x8x128xf32, #tpu.memory_space<vmem>>, vector<1x8x128xf32>
    %167 = vector.shape_cast %166 : vector<1x8x128xf32> to vector<8x128xf32>
    %168 = vector.shape_cast %143 : vector<8x128xf32> to vector<1x8x128xf32>
    tpu.vector_store %arg5[%c3_80, %c0_81, %c0_82], %168 {strides = array<i32>} : memref<5x8x128xf32, #tpu.memory_space<vmem>>, vector<1x8x128xf32>,
    %c3_83 = arith.constant 3 : index
    %c0_84 = arith.constant 0 : index
    %c0_85 = arith.constant 0 : index
    %169 = vector.load %arg6[%c3_83, %c0_84, %c0_85] : memref<5x8x128xf32, #tpu.memory_space<vmem>>, vector<1x8x128xf32>
    %170 = vector.shape_cast %169 : vector<1x8x128xf32> to vector<8x128xf32>
    %171 = vector.shape_cast %162 : vector<8x128xf32> to vector<1x8x128xf32>
    tpu.vector_store %arg6[%c3_83, %c0_84, %c0_85], %171 {strides = array<i32>} : memref<5x8x128xf32, #tpu.memory_space<vmem>>, vector<1x8x128xf32>,
    %c3_86 = arith.constant 3 : index
    %c0_87 = arith.constant 0 : index
    %c0_88 = arith.constant 0 : index
    %172 = vector.load %arg7[%c3_86, %c0_87, %c0_88] : memref<5x8x128xf32, #tpu.memory_space<vmem>>, vector<1x8x128xf32>
    %173 = vector.shape_cast %172 : vector<1x8x128xf32> to vector<8x128xf32>
    %174 = vector.shape_cast %158 : vector<8x128xf32> to vector<1x8x128xf32>
    tpu.vector_store %arg7[%c3_86, %c0_87, %c0_88], %174 {strides = array<i32>} : memref<5x8x128xf32, #tpu.memory_space<vmem>>, vector<1x8x128xf32>,
    %175 = vector.extract_strided_slice %3 {offsets = [32, 0], sizes = [8, 128], strides = [1, 1]} : vector<40x128xf32> to vector<8x128xf32>
    %cst_89 = arith.constant 1.000000e+00 : f32
    %176 = vector.broadcast %cst_89 : f32 to vector<8x128xf32>
    %177 = arith.cmpf ogt, %143, %176 : vector<8x128xf32>
    %178 = arith.extui %177 : vector<8x128xi1> to vector<8x128xi32>
    %179 = arith.sitofp %178 : vector<8x128xi32> to vector<8x128xf32>
    %cst_90 = arith.constant 1.000000e+00 : f32
    %180 = vector.broadcast %cst_90 : f32 to vector<8x128xf32>
    %181 = arith.mulf %180, %143 : vector<8x128xf32>
    %182 = arith.addf %181, %175 : vector<8x128xf32>
    %cst_91 = arith.constant 1.000000e+00 : f32
    %183 = vector.broadcast %cst_91 : f32 to vector<8x128xf32>
    %184 = arith.mulf %179, %183 : vector<8x128xf32>
    %185 = arith.subf %182, %184 : vector<8x128xf32>
    %cst_92 = arith.constant 1.000000e+00 : f32
    %186 = vector.broadcast %cst_92 : f32 to vector<8x128xf32>
    %187 = arith.cmpf ogt, %185, %186 : vector<8x128xf32>
    %188 = arith.extui %187 : vector<8x128xi1> to vector<8x128xi32>
    %189 = arith.sitofp %188 : vector<8x128xi32> to vector<8x128xf32>
    %cst_93 = arith.constant dense<0.000000e+00> : vector<8x128xf32>
    %190 = tpu.matmul %189, %4, %cst_93 {dimension_numbers = #tpu.dot_dimension_numbers<[1], [0], [0], [1], [0, 0, 1, 1], [], []>} : vector<8x128xf32>, vector<128x128xf32>, vector<8x128xf32> -> vector<8x128xf32>
    %cst_94 = arith.constant 1.000000e+00 : f32
    %191 = vector.broadcast %cst_94 : f32 to vector<8x128xf32>
    %192 = arith.cmpf ogt, %158, %191 : vector<8x128xf32>
    %193 = arith.extui %192 : vector<8x128xi1> to vector<8x128xi32>
    %194 = arith.sitofp %193 : vector<8x128xi32> to vector<8x128xf32>
    %cst_95 = arith.constant 1.000000e+00 : f32
    %195 = vector.broadcast %cst_95 : f32 to vector<8x128xf32>
    %196 = arith.mulf %195, %158 : vector<8x128xf32>
    %197 = arith.addf %196, %190 : vector<8x128xf32>
    %cst_96 = arith.constant 1.000000e+00 : f32
    %198 = vector.broadcast %cst_96 : f32 to vector<8x128xf32>
    %199 = arith.mulf %194, %198 : vector<8x128xf32>
    %200 = arith.subf %197, %199 : vector<8x128xf32>
    %cst_97 = arith.constant 1.000000e+00 : f32
    %201 = vector.broadcast %cst_97 : f32 to vector<8x128xf32>
    %202 = arith.cmpf ogt, %200, %201 : vector<8x128xf32>
    %203 = arith.extui %202 : vector<8x128xi1> to vector<8x128xi32>
    %204 = arith.sitofp %203 : vector<8x128xi32> to vector<8x128xf32>
    %c4 = arith.constant 4 : index
    %c0_98 = arith.constant 0 : index
    %c0_99 = arith.constant 0 : index
    %205 = vector.load %arg4[%c4, %c0_98, %c0_99] : memref<5x8x128xf32, #tpu.memory_space<vmem>>, vector<1x8x128xf32>
    %206 = vector.shape_cast %205 : vector<1x8x128xf32> to vector<8x128xf32>
    %207 = vector.shape_cast %189 : vector<8x128xf32> to vector<1x8x128xf32>
    tpu.vector_store %arg4[%c4, %c0_98, %c0_99], %207 {strides = array<i32>} : memref<5x8x128xf32, #tpu.memory_space<vmem>>, vector<1x8x128xf32>,
    %c4_100 = arith.constant 4 : index
    %c0_101 = arith.constant 0 : index
    %c0_102 = arith.constant 0 : index
    %208 = vector.load %arg5[%c4_100, %c0_101, %c0_102] : memref<5x8x128xf32, #tpu.memory_space<vmem>>, vector<1x8x128xf32>
    %209 = vector.shape_cast %208 : vector<1x8x128xf32> to vector<8x128xf32>
    %210 = vector.shape_cast %185 : vector<8x128xf32> to vector<1x8x128xf32>
    tpu.vector_store %arg5[%c4_100, %c0_101, %c0_102], %210 {strides = array<i32>} : memref<5x8x128xf32, #tpu.memory_space<vmem>>, vector<1x8x128xf32>,
    %c4_103 = arith.constant 4 : index
    %c0_104 = arith.constant 0 : index
    %c0_105 = arith.constant 0 : index
    %211 = vector.load %arg6[%c4_103, %c0_104, %c0_105] : memref<5x8x128xf32, #tpu.memory_space<vmem>>, vector<1x8x128xf32>
    %212 = vector.shape_cast %211 : vector<1x8x128xf32> to vector<8x128xf32>
    %213 = vector.shape_cast %204 : vector<8x128xf32> to vector<1x8x128xf32>
    tpu.vector_store %arg6[%c4_103, %c0_104, %c0_105], %213 {strides = array<i32>} : memref<5x8x128xf32, #tpu.memory_space<vmem>>, vector<1x8x128xf32>,
    %c4_106 = arith.constant 4 : index
    %c0_107 = arith.constant 0 : index
    %c0_108 = arith.constant 0 : index
    %214 = vector.load %arg7[%c4_106, %c0_107, %c0_108] : memref<5x8x128xf32, #tpu.memory_space<vmem>>, vector<1x8x128xf32>
    %215 = vector.shape_cast %214 : vector<1x8x128xf32> to vector<8x128xf32>
    %216 = vector.shape_cast %200 : vector<8x128xf32> to vector<1x8x128xf32>
    tpu.vector_store %arg7[%c4_106, %c0_107, %c0_108], %216 {strides = array<i32>} : memref<5x8x128xf32, #tpu.memory_space<vmem>>, vector<1x8x128xf32>,
    return
  }
  func.func @transform_0(%arg0: i32) -> (i32, i32, i32) {
    %c0_i32 = arith.constant 0 : i32
    %c0_i32_0 = arith.constant 0 : i32
    %c0_i32_1 = arith.constant 0 : i32
    %c0_i32_2 = arith.constant 0 : i32
    return %c0_i32, %c0_i32_0, %c0_i32_1 : i32, i32, i32
  }
  func.func @transform_1(%arg0: i32) -> (i32, i32) {
    %c0_i32 = arith.constant 0 : i32
    %c0_i32_0 = arith.constant 0 : i32
    %c0_i32_1 = arith.constant 0 : i32
    return %c0_i32, %c0_i32_0 : i32, i32
  }
  func.func @transform_2(%arg0: i32) -> (i32, i32) {
    %c0_i32 = arith.constant 0 : i32
    %c0_i32_0 = arith.constant 0 : i32
    %c0_i32_1 = arith.constant 0 : i32
    return %c0_i32, %c0_i32_0 : i32, i32
  }
  func.func @transform_3(%arg0: i32) -> (i32, i32, i32) {
    %c0_i32 = arith.constant 0 : i32
    %c0_i32_0 = arith.constant 0 : i32
    %c0_i32_1 = arith.constant 0 : i32
    %c0_i32_2 = arith.constant 0 : i32
    return %c0_i32, %c0_i32_0, %c0_i32_1 : i32, i32, i32
  }
  func.func @transform_4(%arg0: i32) -> (i32, i32, i32) {
    %c0_i32 = arith.constant 0 : i32
    %c0_i32_0 = arith.constant 0 : i32
    %c0_i32_1 = arith.constant 0 : i32
    %c0_i32_2 = arith.constant 0 : i32
    return %c0_i32, %c0_i32_0, %c0_i32_1 : i32, i32, i32
  }
  func.func @transform_5(%arg0: i32) -> (i32, i32, i32) {
    %c0_i32 = arith.constant 0 : i32
    %c0_i32_0 = arith.constant 0 : i32
    %c0_i32_1 = arith.constant 0 : i32
    %c0_i32_2 = arith.constant 0 : i32
    return %c0_i32, %c0_i32_0, %c0_i32_1 : i32, i32, i32
  }
  func.func @transform_6(%arg0: i32) -> (i32, i32, i32) {
    %c0_i32 = arith.constant 0 : i32
    %c0_i32_0 = arith.constant 0 : i32
    %c0_i32_1 = arith.constant 0 : i32
    %c0_i32_2 = arith.constant 0 : i32
    return %c0_i32, %c0_i32_0, %c0_i32_1 : i32, i32, i32
  }
}

</mosaic_0001>

<bundles_post_ra>
// kernel: tpu_custom_call.1
= control target key start
LH: loop header
LB: loop body
LE: loop exit
PB: predicated region body
PF: predicated region fallthrough
CT: control target
= control target key end

     0   :  { %12 = vsyncpa [#allocation3], 0  ;;  %s1668_s0 = inlined_call_operand.hbm [shape: f32[5,8,128], index: 0, kind: input, shape index: {}]   ;;  %s1669_s1 = inlined_call_operand.hbm [shape: f32[128,128], index: 1, kind: input, shape index: {}]   ;;  %s1670_s2 = inlined_call_operand.hbm [shape: f32[128,128], index: 2, kind: input, shape index: {}]   ;;  %s1671_s3 = inlined_call_operand.hbm [shape: f32[5,8,128], index: 3, kind: output, shape index: {0}]   ;;  %s1672_s4 = inlined_call_operand.hbm [shape: f32[5,8,128], index: 4, kind: output, shape index: {1}]   ;;  %s1673_s5 = inlined_call_operand.hbm [shape: f32[5,8,128], index: 5, kind: output, shape index: {2}]   ;;  %s1674_s6 = inlined_call_operand.hbm [shape: f32[5,8,128], index: 6, kind: output, shape index: {3}]  }
   0x1   :  { %13 = vsyncpa [#allocation6], 0 }
   0x2   :  { %14 = vsyncpa [#allocation4], 0 }
   0x3   :  { %15 = vsyncpa [#allocation10], 0 }
   0x4   :  { %16 = vsyncpa [#allocation13], 0  ;;  %s1356_s21 = smov [#allocation5]   ;;  %s1357_s23 = smov [#allocation2]  }
   0x5   :  { %s34_s22 = sshll.u32 %s1356_s21, 4  ;;  %s22_s24 = sshll.u32 %s1357_s23, 4  ;;  %s35_s22 = int_to_ptr.vmem [resolvable:$true] %s34_s22  ;;  %s1404_s24 = int_to_ptr.vmem [resolvable:$true] %s22_s24 }
   0x6   :  { %s1192_s27 = scalar_lea.hbm %s1669_s1, 2048 }
   0x7   :  { %p1193_p0 = scmp.ne.s32.totalorder %s1669_s1, %s1192_s27  ;;  %p1196_p1 = scmp.lt.u32.totalorder %s1192_s27, %s1669_s1 }
   0x9   :  { %p1198_p2 = pnand %p1196_p1, %p1193_p0 }
   0xb   :  { %1201 = shalt.err (!%p1198_p2)
}
   0xc   :  { %s1202_s8 = scalar_lea.vmem %s35_s22, 2048  ;;  %p1207_p4 = scmp.lt.s32.totalorder %s35_s22, %s35_s22 }
   0xd   :  { %p1203_p3 = scmp.ne.s32.totalorder %s35_s22, %s1202_s8  ;;  %p1208_p5 = scmp.lt.s32.totalorder %s1202_s8, %s1202_s8 }
   0xf   :  { %p1209_p6 = por %p1208_p5, %p1207_p4 }
  0x11   :  { %p1210_p7 = pnand %p1209_p6, %p1203_p3 }
  0x13   :  { %1213 = shalt.err (!%p1210_p7)
}
  0x14   :  { %s1358_s9 = smov 128   ;;  %s1359_s10 = smov 8  }
  0x15   :  { %40 = dma.hbm_to_vmem [thread:$0]  %s1669_s1, 2048, %s35_s22, [#allocation6], %s1358_s9, %s1358_s9, %s1359_s10  }
  0x16   :  { %s1214_s15 = scalar_lea.hbm %s1668_s0, 640 }
  0x17   :  { %p1215_p8 = scmp.ne.s32.totalorder %s1668_s0, %s1214_s15  ;;  %p1218_p9 = scmp.lt.u32.totalorder %s1214_s15, %s1668_s0 }
  0x19   :  { %p1220_p10 = pnand %p1218_p9, %p1215_p8 }
  0x1b   :  { %1223 = shalt.err (!%p1220_p10)
}
  0x1c   :  { %s1224_s20 = scalar_lea.vmem %s1404_s24, 640  ;;  %p1229_p12 = scmp.lt.s32.totalorder %s1404_s24, %s1404_s24 }
  0x1d   :  { %p1225_p11 = scmp.ne.s32.totalorder %s1404_s24, %s1224_s20  ;;  %p1230_p13 = scmp.lt.s32.totalorder %s1224_s20, %s1224_s20 }
  0x1f   :  { %p1231_p0 = por %p1230_p13, %p1229_p12 }
  0x21   :  { %p1232_p1 = pnand %p1231_p0, %p1225_p11 }
  0x23   :  { %1235 = shalt.err (!%p1232_p1)
}
  0x24   :  { %28 = dma.hbm_to_vmem [thread:$0]  %s1668_s0, 640, %s1404_s24, [#allocation3], %s1358_s9, %s1358_s9, %s1359_s10  }
  0x25   :  { %s1360_s22 = smov [#allocation7]   ;;  %s1236_s27 = scalar_lea.hbm %s1670_s2, 2048 }
  0x26   :  { %s46_s23 = sshll.u32 %s1360_s22, 4  ;;  %p1237_p2 = scmp.ne.s32.totalorder %s1670_s2, %s1236_s27  ;;  %s47_s23 = int_to_ptr.vmem [resolvable:$true] %s46_s23 }
  0x27   :  { %p1240_p3 = scmp.lt.u32.totalorder %s1236_s27, %s1670_s2 }
  0x29   :  { %p1242_p4 = pnand %p1240_p3, %p1237_p2 }
  0x2b   :  { %1245 = shalt.err (!%p1242_p4)
}
  0x2c   :  { %s1246_s8 = scalar_lea.vmem %s47_s23, 2048  ;;  %p1251_p6 = scmp.lt.s32.totalorder %s47_s23, %s47_s23 }
  0x2d   :  { %p1247_p5 = scmp.ne.s32.totalorder %s47_s23, %s1246_s8  ;;  %p1252_p7 = scmp.lt.s32.totalorder %s1246_s8, %s1246_s8 }
  0x2f   :  { %p1253_p8 = por %p1252_p7, %p1251_p6 }
  0x31   :  { %p1254_p9 = pnand %p1253_p8, %p1247_p5 }
  0x33   :  { %1257 = shalt.err (!%p1254_p9)
}
  0x34   :  { %52 = dma.hbm_to_vmem [thread:$0]  %s1670_s2, 2048, %s47_s23, [#allocation6], %s1358_s9, %s1358_s9, %s1359_s10  }
  0x35   :  { %1346 = dma.done.wait [#allocation3], 640  }
  0x36   :  { %1347 = vsyncadd [#allocation3], 4294966656 }
  0x37   :  { %1348 = dma.done.wait [#allocation6], 4096  }
  0x38   :  { %1349 = vsyncadd [#allocation6], 4294963200  ;;  %v1361_v0 = vmov 0.0|0.0   ;;  %vm1362_vm0 = vmmov 0   ;;  %v1363_v1 = vmov 0.0   ;;  %v67_v2 = vld [vmem:[#allocation5] sm:$0xff] }
  0x39   :  { %1035 = vmatprep.subr.bf16.mxu0 %v1361_v0  ;;  %845 = vmatprep.mubr.msk.f32.mxu0 %vm1362_vm0, %v1363_v1  ;;  %v68_v3 = vld [vmem:[#allocation5 + $0x8] sm:$0xff]  ;;  %v69_v4 = vld [vmem:[#allocation5 + $0x10] sm:$0xff]  ;;  %v70_v6 = vld [vmem:[#allocation5 + $0x18] sm:$0xff]  ;;  %v1364_v57 = vmov 1.0   ;;  %s1365_s2 = smov [#allocation9]   ;;  %s1366_s12 = smov [#allocation8]  }
  0x3a   :  { %1059 = vmatprep.subr.bf16.mxu1 %v1361_v0  ;;  %892 = vmatprep.mubr.msk.f32.mxu1 %vm1362_vm0, %v1363_v1  ;;  %v1036_v5 = vpack.c.bf16 %v68_v3, %v67_v2  ;;  %v1039_v7 = vpack.c.bf16 %v70_v6, %v69_v4  ;;  %v71_v8 = vld [vmem:[#allocation5 + $0x20] sm:$0xff]  ;;  %v72_v9 = vld [vmem:[#allocation5 + $0x28] sm:$0xff]  ;;  %v175_v13 = vld [vmem:[#allocation7 + $0x10] sm:$0xff]  ;;  %s644_s11 = sshll.u32 %s1365_s2, 4  ;;  %s632_s13 = sshll.u32 %s1366_s12, 4  ;;  %s645_s11 = int_to_ptr.vmem [resolvable:$true] %s644_s11  ;;  %s633_s13 = int_to_ptr.vmem [resolvable:$true] %s632_s13 }
  0x3b   :  { %v1042_v10 = vpack.c.bf16 %v72_v9, %v71_v8  ;;  %v173_v11 = vld [vmem:[#allocation7] sm:$0xff]  ;;  %v174_v12 = vld [vmem:[#allocation7 + $0x8] sm:$0xff]  ;;  %v73_v14 = vld [vmem:[#allocation5 + $0x30] sm:$0xff]  ;;  %s1258_s14 = scalar_lea.vmem %s645_s11, 640  ;;  %p1263_p11 = scmp.lt.s32.totalorder %s645_s11, %s645_s11 }
  0x3c   :  { %1037 = vmatpush3.bf16.msra.mxu0 %v1036_v5  ;;  %v74_v15 = vld [vmem:[#allocation5 + $0x38] sm:$0xff]  ;;  %v1464_v16 = vpack.c.bf16 %v174_v12, %v173_v11  ;;  %v177_v20 = vld [vmem:[#allocation7 + $0x20] sm:$0xff]  ;;  %v178_v21 = vld [vmem:[#allocation7 + $0x28] sm:$0xff]  ;;  %p1259_p10 = scmp.ne.s32.totalorder %s645_s11, %s1258_s14  ;;  %p1264_p12 = scmp.lt.s32.totalorder %s1258_s14, %s1258_s14 }
  0x3d   :  { %1038 = vmatprep.subr.bf16.mxu0 %v1361_v0  ;;  %v176_v17 = vld [vmem:[#allocation7 + $0x18] sm:$0xff]  ;;  %v1045_v19 = vpack.c.bf16 %v74_v15, %v73_v14  ;;  %v75_v22 = vld [vmem:[#allocation5 + $0x40] sm:$0xff]  ;;  %v76_v23 = vld [vmem:[#allocation5 + $0x48] sm:$0xff]  ;;  %v1472_v24 = vpack.c.bf16 %v178_v21, %v177_v20 }
  0x3e   :  { %1061 = vmatpush3.bf16.msra.mxu1 %v1464_v16  ;;  %v1467_v18 = vpack.c.bf16 %v176_v17, %v175_v13  ;;  %v1048_v25 = vpack.c.bf16 %v76_v23, %v75_v22  ;;  %v179_v26 = vld [vmem:[#allocation7 + $0x30] sm:$0xff]  ;;  %v180_v27 = vld [vmem:[#allocation7 + $0x38] sm:$0xff]  ;;  %v181_v32 = vld [vmem:[#allocation7 + $0x40] sm:$0xff]  ;;  %p1265_p13 = por %p1264_p12, %p1263_p11 }
  0x3f   :  { %1062 = vmatprep.subr.bf16.mxu1 %v1361_v0  ;;  %v77_v28 = vld [vmem:[#allocation5 + $0x50] sm:$0xff]  ;;  %v78_v29 = vld [vmem:[#allocation5 + $0x58] sm:$0xff]  ;;  %v1477_v30 = vpack.c.bf16 %v180_v27, %v179_v26  ;;  %v182_v33 = vld [vmem:[#allocation7 + $0x48] sm:$0xff] }
  0x40   :  { %1040 = vmatpush3.bf16.msra.mxu0 %v1039_v7  ;;  %v1051_v31 = vpack.c.bf16 %v78_v29, %v77_v28  ;;  %v79_v34 = vld [vmem:[#allocation5 + $0x60] sm:$0xff]  ;;  %v80_v35 = vld [vmem:[#allocation5 + $0x68] sm:$0xff]  ;;  %v1482_v36 = vpack.c.bf16 %v182_v33, %v181_v32  ;;  %v183_v38 = vld [vmem:[#allocation7 + $0x50] sm:$0xff]  ;;  %p1266_p0 = pnand %p1265_p13, %p1259_p10 }
  0x41   :  { %1041 = vmatprep.subr.bf16.mxu0 %v1361_v0  ;;  %v1054_v37 = vpack.c.bf16 %v80_v35, %v79_v34  ;;  %v184_v39 = vld [vmem:[#allocation7 + $0x58] sm:$0xff]  ;;  %v81_v40 = vld [vmem:[#allocation5 + $0x70] sm:$0xff]  ;;  %v185_v44 = vld [vmem:[#allocation7 + $0x60] sm:$0xff] }
  0x42   :  { %1064 = vmatpush3.bf16.msra.mxu1 %v1467_v18  ;;  %v82_v41 = vld [vmem:[#allocation5 + $0x78] sm:$0xff]  ;;  %v1487_v42 = vpack.c.bf16 %v184_v39, %v183_v38  ;;  %v186_v45 = vld [vmem:[#allocation7 + $0x68] sm:$0xff]  ;;  %v187_v48 = vld [vmem:[#allocation7 + $0x70] sm:$0xff] }
  0x43   :  { %1065 = vmatprep.subr.bf16.mxu1 %v1361_v0  ;;  %v1057_v43 = vpack.c.bf16 %v82_v41, %v81_v40  ;;  %v1492_v46 = vpack.c.bf16 %v186_v45, %v185_v44  ;;  %v62_v47 = vld [vmem:[#allocation2] sm:$0xff]  ;;  %v63_v51 = vld [vmem:[#allocation2 + $0x8] sm:$0xff]  ;;  %v64_v52 = vld [vmem:[#allocation2 + $0x10] sm:$0xff] }
  0x44   :  { %1043 = vmatpush3.bf16.msra.mxu0 %v1042_v10  ;;  %v188_v49 = vld [vmem:[#allocation7 + $0x78] sm:$0xff]  ;;  %v65_v53 = vld [vmem:[#allocation2 + $0x18] sm:$0xff] }
  0x45   :  { %1044 = vmatprep.subr.bf16.mxu0 %v1361_v0  ;;  %v1497_v50 = vpack.c.bf16 %v188_v49, %v187_v48  ;;  %v66_v54 = vld [vmem:[#allocation2 + $0x20] sm:$0xff] }
  0x46   :  { %1067 = vmatpush3.bf16.msra.mxu1 %v1472_v24 }
  0x47   :  { %1068 = vmatprep.subr.bf16.mxu1 %v1361_v0 }
  0x48   :  { %1046 = vmatpush3.bf16.msra.mxu0 %v1045_v19 }
  0x49   :  { %1047 = vmatprep.subr.bf16.mxu0 %v1361_v0 }
  0x4a   :  { %1070 = vmatpush3.bf16.msra.mxu1 %v1477_v30 }
  0x4b   :  { %1071 = vmatprep.subr.bf16.mxu1 %v1361_v0 }
  0x4c   :  { %1049 = vmatpush3.bf16.msra.mxu0 %v1048_v25 }
  0x4d   :  { %1050 = vmatprep.subr.bf16.mxu0 %v1361_v0 }
  0x4e   :  { %1073 = vmatpush3.bf16.msra.mxu1 %v1482_v36 }
  0x4f   :  { %1074 = vmatprep.subr.bf16.mxu1 %v1361_v0 }
  0x50   :  { %1052 = vmatpush3.bf16.msra.mxu0 %v1051_v31 }
  0x51   :  { %1053 = vmatprep.subr.bf16.mxu0 %v1361_v0 }
  0x52   :  { %1076 = vmatpush3.bf16.msra.mxu1 %v1487_v42 }
  0x53   :  { %1077 = vmatprep.subr.bf16.mxu1 %v1361_v0 }
  0x54   :  { %1055 = vmatpush3.bf16.msra.mxu0 %v1054_v37 }
  0x55   :  { %1056 = vmatprep.subr.bf16.mxu0 %v1361_v0 }
  0x56   :  { %1079 = vmatpush3.bf16.msra.mxu1 %v1492_v46 }
  0x57   :  { %1080 = vmatprep.subr.bf16.mxu1 %v1361_v0 }
  0x58   :  { %1058 = vmatpush3.bf16.msra.mxu0 %v1057_v43 }
  0x59   :  { %1083 = vmatprep.subr.bf16.mxu0 %v1361_v0 }
  0x5a   :  { %1082 = vmatpush3.bf16.msra.mxu1 %v1497_v50 }
  0x5b   :  { %846 = vmatmul.mubr.f32.vlgmr.msra.gmra.mrb[0].mxu0 %v62_v47  ;;  %1107 = vmatprep.subr.bf16.mxu1 %v1361_v0 }
  0x5c   :  { %848 = vmatprep.mubr.msk.f32.mxu0 %vm1362_vm0, %v1363_v1  ;;  %1085 = vmatpush3.bf16.msra.mxu0 %v1464_v16 }
  0x5d   :  { %1086 = vmatprep.subr.bf16.mxu0 %v1361_v0 }
  0x5f   :  { %849 = vmatmul.mubr.f32.gmra.mrb[2].mxu0 %v63_v51 }
  0x60   :  { %851 = vmatprep.mubr.msk.f32.mxu0 %vm1362_vm0, %v1363_v1  ;;  %1088 = vmatpush3.bf16.msra.mxu0 %v1467_v18 }
  0x61   :  { %1089 = vmatprep.subr.bf16.mxu0 %v1361_v0 }
  0x63   :  { %852 = vmatmul.mubr.f32.gmra.mrb[4].mxu0 %v64_v52 }
  0x64   :  { %854 = vmatprep.mubr.msk.f32.mxu0 %vm1362_vm0, %v1363_v1  ;;  %1091 = vmatpush3.bf16.msra.mxu0 %v1472_v24 }
  0x65   :  { %1092 = vmatprep.subr.bf16.mxu0 %v1361_v0 }
  0x67   :  { %855 = vmatmul.mubr.f32.gmra.mrb[6].mxu0 %v65_v53 }
  0x68   :  { %857 = vmatprep.mubr.msk.f32.mxu0 %vm1362_vm0, %v1363_v1  ;;  %1094 = vmatpush3.bf16.msra.mxu0 %v1477_v30 }
  0x69   :  { %1095 = vmatprep.subr.bf16.mxu0 %v1361_v0 }
  0x6b   :  { %858 = vmatmul.mubr.f32.gmra.mrb[8].mxu0 %v66_v54 }
  0x6c   :  { %1097 = vmatpush3.bf16.msra.mxu0 %v1482_v36  ;;  %927 = vmatprep.mubr.msk.f32.mxu0 %vm1362_vm0, %v1363_v1 }
  0x6d   :  { %1098 = vmatprep.subr.bf16.mxu0 %v1361_v0 }
  0x70   :  { %1100 = vmatpush3.bf16.msra.mxu0 %v1487_v42 }
  0x71   :  { %1101 = vmatprep.subr.bf16.mxu0 %v1361_v0 }
  0x74   :  { %1103 = vmatpush3.bf16.msra.mxu0 %v1492_v46 }
  0x75   :  { %1104 = vmatprep.subr.bf16.mxu0 %v1361_v0 }
  0x78   :  { %1106 = vmatpush3.bf16.msra.mxu0 %v1497_v50 }
  0x79   :  { %1131 = vmatprep.subr.bf16.mxu0 %v1361_v0 }
 0x12e   :  { %v149_v55 = vpop.f32.mrb[0].mxu0 }
 0x12f   :  { %272 = vst [vmem:[#allocation9] sm:$0xff] %v149_v55  ;;  %v847_v56 = vpop.f32.mrb[1].mxu0  ;;  %vm194_vm1 = vcmp.gt.f32.partialorder %v149_v55, 1.0 }
 0x130   :  { %893 = vmatmul.mubr.msk.f32.vlgmr.msra.gmra.mrb[0].mxu1 %vm194_vm1, %v1364_v57  ;;  %v692_v58 = vsel %vm194_vm1, 1.0, %v1363_v1 }
 0x131   :  { %1109 = vmatpush3.bf16.msra.mxu1 %v1464_v16  ;;  %271 = vst [vmem:[#allocation8] sm:$0xff] %v692_v58  ;;  %962 = vmatprep.mubr.msk.f32.mxu1 %vm1362_vm0, %v1363_v1 }
 0x132   :  { %v154_v59 = vpop.f32.mrb[2].mxu0  ;;  %1110 = vmatprep.subr.bf16.mxu1 %v1361_v0 }
 0x133   :  { %v275_v60 = vadd.f32 %v154_v59, %v149_v55  ;;  %v850_v61 = vpop.f32.mrb[3].mxu0 }
 0x135   :  { %v276_v62 = vsub.f32 %v275_v60, %v692_v58  ;;  %1112 = vmatpush3.bf16.msra.mxu1 %v1467_v18 }
 0x136   :  { %v159_v63 = vpop.f32.mrb[4].mxu0  ;;  %1113 = vmatprep.subr.bf16.mxu1 %v1361_v0 }
 0x137   :  { %358 = vst [vmem:[#allocation9 + $0x8] sm:$0xff] %v276_v62  ;;  %vm277_vm2 = vcmp.gt.f32.partialorder %v276_v62, 1.0  ;;  %v363_v2 = vadd.f32 %v276_v62, %v159_v63  ;;  %v853_v3 = vpop.f32.mrb[5].mxu0 }
 0x138   :  { %v695_v4 = vsel %vm277_vm2, 1.0, %v1363_v1  ;;  %928 = vmatmul.mubr.msk.f32.vlgmr.msra.gmra.mrb[10].mxu0 %vm277_vm2, %v1364_v57 }
 0x139   :  { %356 = vst [vmem:[#allocation8 + $0x8] sm:$0xff] %v695_v4  ;;  %v364_v5 = vsub.f32 %v363_v2, %v695_v4  ;;  %1115 = vmatpush3.bf16.msra.mxu1 %v1472_v24  ;;  %1133 = vmatpush3.bf16.msra.mxu0 %v1464_v16 }
 0x13a   :  { %v164_v6 = vpop.f32.mrb[6].mxu0  ;;  %1116 = vmatprep.subr.bf16.mxu1 %v1361_v0  ;;  %1134 = vmatprep.subr.bf16.mxu0 %v1361_v0 }
 0x13b   :  { %446 = vst [vmem:[#allocation9 + $0x10] sm:$0xff] %v364_v5  ;;  %vm365_vm3 = vcmp.gt.f32.partialorder %v364_v5, 1.0  ;;  %v451_v7 = vadd.f32 %v364_v5, %v164_v6  ;;  %v856_v8 = vpop.f32.mrb[7].mxu0  ;;  %997 = vmatprep.mubr.msk.f32.mxu0 %vm1362_vm0, %v1363_v1 }
 0x13c   :  { %v698_v9 = vsel %vm365_vm3, 1.0, %v1363_v1 }
 0x13d   :  { %444 = vst [vmem:[#allocation8 + $0x10] sm:$0xff] %v698_v9  ;;  %v452_v10 = vsub.f32 %v451_v7, %v698_v9  ;;  %1118 = vmatpush3.bf16.msra.mxu1 %v1477_v30  ;;  %1136 = vmatpush3.bf16.msra.mxu0 %v1467_v18 }
 0x13e   :  { %v169_v11 = vpop.f32.mrb[8].mxu0  ;;  %1119 = vmatprep.subr.bf16.mxu1 %v1361_v0  ;;  %1137 = vmatprep.subr.bf16.mxu0 %v1361_v0 }
 0x13f   :  { %534 = vst [vmem:[#allocation9 + $0x18] sm:$0xff] %v452_v10  ;;  %vm453_vm4 = vcmp.gt.f32.partialorder %v452_v10, 1.0  ;;  %v539_v12 = vadd.f32 %v452_v10, %v169_v11  ;;  %v859_v13 = vpop.f32.mrb[9].mxu0 }
 0x140   :  { %v701_v14 = vsel %vm453_vm4, 1.0, %v1363_v1 }
 0x141   :  { %532 = vst [vmem:[#allocation8 + $0x18] sm:$0xff] %v701_v14  ;;  %v540_v15 = vsub.f32 %v539_v12, %v701_v14  ;;  %1121 = vmatpush3.bf16.msra.mxu1 %v1482_v36  ;;  %1139 = vmatpush3.bf16.msra.mxu0 %v1472_v24 }
 0x142   :  { %1122 = vmatprep.subr.bf16.mxu1 %v1361_v0  ;;  %1140 = vmatprep.subr.bf16.mxu0 %v1361_v0 }
 0x143   :  { %vm541_vm5 = vcmp.gt.f32.partialorder %v540_v15, 1.0  ;;  %622 = vst [vmem:[#allocation9 + $0x20] sm:$0xff] %v540_v15 }
 0x144   :  { %v704_v17 = vsel %vm541_vm5, 1.0, %v1363_v1 }
 0x145   :  { %620 = vst [vmem:[#allocation8 + $0x20] sm:$0xff] %v704_v17  ;;  %1124 = vmatpush3.bf16.msra.mxu1 %v1487_v42  ;;  %1142 = vmatpush3.bf16.msra.mxu0 %v1477_v30 }
 0x146   :  { %1125 = vmatprep.subr.bf16.mxu1 %v1361_v0  ;;  %1143 = vmatprep.subr.bf16.mxu0 %v1361_v0 }
 0x149   :  { %1127 = vmatpush3.bf16.msra.mxu1 %v1492_v46  ;;  %1145 = vmatpush3.bf16.msra.mxu0 %v1482_v36 }
 0x14a   :  { %1128 = vmatprep.subr.bf16.mxu1 %v1361_v0  ;;  %1146 = vmatprep.subr.bf16.mxu0 %v1361_v0 }
 0x14d   :  { %1130 = vmatpush3.bf16.msra.mxu1 %v1497_v50  ;;  %1148 = vmatpush3.bf16.msra.mxu0 %v1487_v42 }
 0x14e   :  { %1149 = vmatprep.subr.bf16.mxu0 %v1361_v0  ;;  %1155 = vmatprep.subr.bf16.mxu1 %v1361_v0 }
 0x150   :  { %963 = vmatmul.mubr.msk.f32.vlgmr.msra.gmra.mrb[2].mxu1 %vm365_vm3, %v1364_v57 }
 0x151   :  { %1151 = vmatpush3.bf16.msra.mxu0 %v1492_v46  ;;  %1157 = vmatpush3.bf16.msra.mxu1 %v1464_v16 }
 0x152   :  { %1152 = vmatprep.subr.bf16.mxu0 %v1361_v0  ;;  %1158 = vmatprep.subr.bf16.mxu1 %v1361_v0 }
 0x153   :  { %1032 = vmatprep.mubr.msk.f32.mxu1 %vm1362_vm0, %v1363_v1 }
 0x155   :  { %1154 = vmatpush3.bf16.msra.mxu0 %v1497_v50  ;;  %1160 = vmatpush3.bf16.msra.mxu1 %v1467_v18 }
 0x156   :  { %1161 = vmatprep.subr.bf16.mxu1 %v1361_v0 }
 0x158   :  { %998 = vmatmul.mubr.msk.f32.vlgmr.msra.gmra.mrb[12].mxu0 %vm453_vm4, %v1364_v57 }
 0x159   :  { %1163 = vmatpush3.bf16.msra.mxu1 %v1472_v24 }
 0x15a   :  { %1164 = vmatprep.subr.bf16.mxu1 %v1361_v0 }
 0x15d   :  { %1166 = vmatpush3.bf16.msra.mxu1 %v1477_v30 }
 0x15e   :  { %1167 = vmatprep.subr.bf16.mxu1 %v1361_v0 }
 0x161   :  { %1169 = vmatpush3.bf16.msra.mxu1 %v1482_v36 }
 0x162   :  { %1170 = vmatprep.subr.bf16.mxu1 %v1361_v0 }
 0x165   :  { %1172 = vmatpush3.bf16.msra.mxu1 %v1487_v42 }
 0x166   :  { %1173 = vmatprep.subr.bf16.mxu1 %v1361_v0 }
 0x169   :  { %1175 = vmatpush3.bf16.msra.mxu1 %v1492_v46 }
 0x16a   :  { %1176 = vmatprep.subr.bf16.mxu1 %v1361_v0 }
 0x16d   :  { %1178 = vmatpush3.bf16.msra.mxu1 %v1497_v50 }
 0x170   :  { %1033 = vmatmul.mubr.msk.f32.vlgmr.msra.gmra.mrb[4].mxu1 %vm541_vm5, %v1364_v57 }
 0x171   :  { %1269 = shalt.err (!%p1266_p0)
}
 0x172   :  { %s1270_s17 = scalar_lea.hbm %s1672_s4, 640 }
 0x173   :  { %p1271_p1 = scmp.ne.s32.totalorder %s1672_s4, %s1270_s17  ;;  %p1274_p2 = scmp.lt.u32.totalorder %s1270_s17, %s1672_s4 }
 0x175   :  { %p1276_p3 = pnand %p1274_p2, %p1271_p1 }
 0x177   :  { %1279 = shalt.err (!%p1276_p3)
}
 0x178   :  { %650 = dma.vmem_to_hbm [thread:$0]  %s645_s11, 640, %s1672_s4, [#allocation10], %s1358_s9, %s1358_s9, %s1359_s10  }
 0x179   :  { %s1280_s23 = scalar_lea.vmem %s633_s13, 640  ;;  %p1285_p5 = scmp.lt.s32.totalorder %s633_s13, %s633_s13 }
 0x17a   :  { %p1281_p4 = scmp.ne.s32.totalorder %s633_s13, %s1280_s23  ;;  %p1286_p6 = scmp.lt.s32.totalorder %s1280_s23, %s1280_s23 }
 0x17c   :  { %p1287_p7 = por %p1286_p6, %p1285_p5 }
 0x17e   :  { %p1288_p8 = pnand %p1287_p7, %p1281_p4 }
 0x180   :  { %1291 = shalt.err (!%p1288_p8)
}
 0x181   :  { %s1292_s27 = scalar_lea.hbm %s1671_s3, 640 }
 0x182   :  { %p1293_p9 = scmp.ne.s32.totalorder %s1671_s3, %s1292_s27  ;;  %p1296_p10 = scmp.lt.u32.totalorder %s1292_s27, %s1671_s3 }
 0x184   :  { %p1298_p11 = pnand %p1296_p10, %p1293_p9 }
 0x186   :  { %1301 = shalt.err (!%p1298_p11)
}
 0x187   :  { %638 = dma.vmem_to_hbm [thread:$0]  %s633_s13, 640, %s1671_s3, [#allocation4], %s1358_s9, %s1358_s9, %s1359_s10  }
 0x188   :  { %s1367_s3 = smov [#allocation12]   ;;  %s1368_s24 = smov [#allocation11]  }
 0x189   :  { %s668_s0 = sshll.u32 %s1367_s3, 4  ;;  %s656_s2 = sshll.u32 %s1368_s24, 4  ;;  %s669_s0 = int_to_ptr.vmem [resolvable:$true] %s668_s0  ;;  %s1630_s2 = int_to_ptr.vmem [resolvable:$true] %s656_s2 }
 0x18a   :  { %s1302_s11 = scalar_lea.vmem %s669_s0, 640  ;;  %p1307_p13 = scmp.lt.s32.totalorder %s669_s0, %s669_s0 }
 0x18b   :  { %p1303_p12 = scmp.ne.s32.totalorder %s669_s0, %s1302_s11  ;;  %p1308_p0 = scmp.lt.s32.totalorder %s1302_s11, %s1302_s11 }
 0x18d   :  { %p1309_p1 = por %p1308_p0, %p1307_p13 }
 0x18f   :  { %p1310_p2 = pnand %p1309_p1, %p1303_p12 }
 0x203   :  { %v263_v0 = vpop.f32.mrb[0].mxu1 }
 0x204   :  { %vm268_vm6 = vcmp.gt.f32.partialorder %v263_v0, 1.0  ;;  %274 = vst [vmem:[#allocation12] sm:$0xff] %v263_v0  ;;  %v894_v16 = vpop.f32.mrb[1].mxu1 }
 0x205   :  { %v694_v18 = vsel %vm268_vm6, 1.0, %v1363_v1 }
 0x206   :  { %273 = vst [vmem:[#allocation11] sm:$0xff] %v694_v18 }
 0x20b   :  { %v346_v19 = vpop.f32.mrb[10].mxu0 }
 0x20c   :  { %v350_v20 = vadd.f32 %v346_v19, %v263_v0  ;;  %v929_v21 = vpop.f32.mrb[11].mxu0 }
 0x20e   :  { %v351_v22 = vsub.f32 %v350_v20, %v694_v18 }
 0x210   :  { %362 = vst [vmem:[#allocation12 + $0x8] sm:$0xff] %v351_v22  ;;  %vm352_vm7 = vcmp.gt.f32.partialorder %v351_v22, 1.0 }
 0x211   :  { %v697_v23 = vsel %vm352_vm7, 1.0, %v1363_v1 }
 0x212   :  { %360 = vst [vmem:[#allocation11 + $0x8] sm:$0xff] %v697_v23 }
 0x223   :  { %v434_v24 = vpop.f32.mrb[2].mxu1 }
 0x224   :  { %v438_v25 = vadd.f32 %v434_v24, %v351_v22  ;;  %v964_v26 = vpop.f32.mrb[3].mxu1 }
 0x226   :  { %v439_v27 = vsub.f32 %v438_v25, %v697_v23 }
 0x228   :  { %450 = vst [vmem:[#allocation12 + $0x10] sm:$0xff] %v439_v27  ;;  %vm440_vm8 = vcmp.gt.f32.partialorder %v439_v27, 1.0 }
 0x229   :  { %v700_v28 = vsel %vm440_vm8, 1.0, %v1363_v1 }
 0x22a   :  { %448 = vst [vmem:[#allocation11 + $0x10] sm:$0xff] %v700_v28 }
 0x22b   :  { %v522_v29 = vpop.f32.mrb[12].mxu0 }
 0x22c   :  { %v526_v30 = vadd.f32 %v522_v29, %v439_v27  ;;  %v999_v31 = vpop.f32.mrb[13].mxu0 }
 0x22e   :  { %v527_v32 = vsub.f32 %v526_v30, %v700_v28 }
 0x230   :  { %538 = vst [vmem:[#allocation12 + $0x18] sm:$0xff] %v527_v32  ;;  %vm528_vm9 = vcmp.gt.f32.partialorder %v527_v32, 1.0 }
 0x231   :  { %v703_v33 = vsel %vm528_vm9, 1.0, %v1363_v1 }
 0x232   :  { %536 = vst [vmem:[#allocation11 + $0x18] sm:$0xff] %v703_v33 }
 0x243   :  { %v610_v34 = vpop.f32.mrb[4].mxu1 }
 0x244   :  { %v614_v35 = vadd.f32 %v610_v34, %v527_v32  ;;  %v1034_v36 = vpop.f32.mrb[5].mxu1 }
 0x246   :  { %v615_v37 = vsub.f32 %v614_v35, %v703_v33 }
 0x248   :  { %vm616_vm10 = vcmp.gt.f32.partialorder %v615_v37, 1.0  ;;  %626 = vst [vmem:[#allocation12 + $0x20] sm:$0xff] %v615_v37 }
 0x249   :  { %v706_v38 = vsel %vm616_vm10, 1.0, %v1363_v1 }
 0x24a   :  { %1313 = shalt.err (!%p1310_p2)
}
 0x24b   :  { %s1314_s14 = scalar_lea.hbm %s1674_s6, 640 }
 0x24c   :  { %p1315_p3 = scmp.ne.s32.totalorder %s1674_s6, %s1314_s14  ;;  %p1318_p4 = scmp.lt.u32.totalorder %s1314_s14, %s1674_s6 }
 0x24e   :  { %p1320_p5 = pnand %p1318_p4, %p1315_p3 }
 0x250   :  { %1323 = shalt.err (!%p1320_p5)
}
 0x251   :  { %674 = dma.vmem_to_hbm [thread:$0]  %s669_s0, 640, %s1674_s6, [#allocation13], %s1358_s9, %s1358_s9, %s1359_s10   ;;  %624 = vst [vmem:[#allocation11 + $0x20] sm:$0xff] %v706_v38 }
 0x252   :  { %s1324_s1 = scalar_lea.vmem %s1630_s2, 640  ;;  %p1329_p7 = scmp.lt.s32.totalorder %s1630_s2, %s1630_s2 }
 0x253   :  { %p1325_p6 = scmp.ne.s32.totalorder %s1630_s2, %s1324_s1  ;;  %p1330_p8 = scmp.lt.s32.totalorder %s1324_s1, %s1324_s1 }
 0x255   :  { %p1331_p9 = por %p1330_p8, %p1329_p7 }
 0x257   :  { %p1332_p10 = pnand %p1331_p9, %p1325_p6 }
 0x259   :  { %1335 = shalt.err (!%p1332_p10)
}
 0x25a   :  { %s1336_s23 = scalar_lea.hbm %s1673_s5, 640 }
 0x25b   :  { %p1337_p11 = scmp.ne.s32.totalorder %s1673_s5, %s1336_s23  ;;  %p1340_p12 = scmp.lt.u32.totalorder %s1336_s23, %s1673_s5 }
 0x25d   :  { %p1342_p13 = pnand %p1340_p12, %p1337_p11 }
 0x25f   :  { %1345 = shalt.err (!%p1342_p13)
}
 0x260   :  { %662 = dma.vmem_to_hbm [thread:$0]  %s1630_s2, 640, %s1673_s5, [#allocation10], %s1358_s9, %s1358_s9, %s1359_s10  }
 0x261   :  { %1350 = dma.done.wait [#allocation4], 640  }
 0x262   :  { %1351 = vsyncadd [#allocation4], 4294966656 }
 0x263   :  { %1352 = dma.done.wait [#allocation10], 1280  }
 0x264   :  { %1353 = vsyncadd [#allocation10], 4294966016 }
 0x265   :  { %1354 = dma.done.wait [#allocation13], 640  }
 0x266   :  { %1355 = vsyncadd [#allocation13], 4294966656 }
 0x267   :  { %687 = vsyncpa [#allocation3], 1 }
 0x268   :  { %688 = vsyncpa [#allocation6], 1 }
 0x269   :  { %689 = vsyncpa [#allocation4], 1 }
 0x26a   :  { %690 = vsyncpa [#allocation10], 1 }
 0x26b   :  { %691 = vsyncpa [#allocation13], 1 }

</bundles_post_ra>
